<compile_context>
chip_gen: v6e
topology: v6e:2x2x1
jax: 0.10.0
libtpu: 0.0.40
codegen_flags: <defaults>
</compile_context>

<pallas_src>
import jax
import jax.numpy as jnp
from jax.experimental import pallas as pl
from jax.experimental.pallas import tpu as pltpu


def _make_kernel(n_valid):
    """n_valid: number of real (unpadded) instances per bag (static)."""

    def kernel(x_ref, uv_ref, w_ref, scores_ref, avg_ref):
        # x_ref block: (TB, Np, D)   -- TB bags per grid step
        # uv_ref     : (D, 2*Hp)     -- fused [0.5*U | V], resident across the grid
        # w_ref      : (1, Hp)       -- 0.5*w as a lane vector, resident
        TB, Np, D = x_ref.shape
        Hp = uv_ref.shape[1] // 2

        x3 = x_ref[...]                                   # (TB, Np, D)
        x2 = x3.reshape(TB * Np, D)                       # free: Np % 8 == 0

        # Fused gated-attention projection on the MXU, f32 accumulation.
        p = jnp.dot(x2, uv_ref[...], preferred_element_type=jnp.float32)  # (TB*Np, 2Hp)

        # sigmoid(xU)*tanh(xV) @ w == (tanh(x*(0.5U)) + 1) * tanh(xV) @ (0.5w)
        # -> exactly 2 EUP transcendentals per projection element.
        gate = jnp.tanh(p[:, :Hp]) + 1.0
        proj = gate * jnp.tanh(p[:, Hp:])                  # (TB*Np, Hp)

        # Hp -> 1 matvec as VPU multiply + lane (XLU) reduce; keeps the MXU free.
        raw = jnp.sum(proj * w_ref[...], axis=-1, keepdims=True)          # (TB*Np, 1)
        raw = raw.reshape(TB, Np, 1)                        # free: Np % 8 == 0

        if n_valid != Np:                                   # static branch
            idx = jax.lax.broadcasted_iota(jnp.int32, (TB, Np, 1), 1)
            raw = jnp.where(idx < n_valid, raw, -1e30)      # mask padded instances

        # Softmax over the instance axis (axis=1 of [B, N, 1]); exact normalization
        # (only TB denominators per block, negligible EUP cost).
        m = jnp.max(raw, axis=1, keepdims=True)             # (TB, 1, 1)
        e = jnp.exp(raw - m)                                # (TB, Np, 1)
        denom = jnp.sum(e, axis=1, keepdims=True)           # (TB, 1, 1)
        attn = e / denom                                    # (TB, Np, 1)

        # Scores keep the module's native (B, N, 1) layout; the byte count is tiny
        # so the lane-sparse store is not worth an extra relayout.
        scores_ref[...] = attn.astype(scores_ref.dtype)

        # Attention-weighted average: multiply in x's dtype, accumulate in f32
        # (no full f32 copy of the x block), lane-dense (TB, D) output slab.
        avg = jnp.sum(x3 * attn.astype(x3.dtype), axis=1, dtype=jnp.float32)  # (TB, D)
        avg_ref[...] = avg.astype(avg_ref.dtype)

    return kernel


def _vmem_capacity_bytes():
    """Per-core VMEM capacity; conservative (v7x) fallback if undetectable."""
    try:
        info = pltpu.get_tpu_info()
        cap = getattr(info, "vmem_capacity_bytes", None)
        if cap:
            return int(cap)
    except Exception:
        pass
    return 64 << 20


def _choose_block_bags(B, Np, D, Hp, x_itemsize, out_itemsize, vmem_cap):
    """Largest TB fitting ~half of VMEM, with full accounting of buffers and
    f32 intermediates.  8-aligned whenever TB != B (avg block sublane dim)."""
    budget = vmem_cap // 2                       # headroom for compiler scratch
    # Resident weights (assume 2 buffers in case single-buffering is unavailable).
    fixed = 2 * (D * 2 * Hp * x_itemsize) + 2 * (8 * Hp * 4)
    avail = max(budget - fixed, 2 << 20)
    per_bag = (
        2 * Np * D * x_itemsize                  # x block, double-buffered
        + 2 * Np * out_itemsize                  # scores block, double-buffered
        + 2 * D * out_itemsize                   # avg block, double-buffered
        + Np * (3 * Hp + 8) * 4                  # f32 intermediates: p, proj, gate/raw/attn
        + D * 4                                  # f32 avg accumulator row
    )
    tb = int(avail // per_bag)
    tb = max(tb, pl.cdiv(128, Np))               # at least fill the MXU M dimension
    if tb >= B:
        if B >= 16:
            # Keep >= 2 grid steps so both TensorCores on dual-core parts get work.
            return pl.cdiv(pl.cdiv(B, 2), 8) * 8
        return B                                 # one block covers all bags
    return max(8, (tb // 8) * 8)                 # round DOWN: stay inside budget


def _pallas_forward(x, UV, w_row, *, TB, n_valid, out_dtype, cost, vmem_limit,
                    single_buffer_weights):
    B_pad, Np, D = x.shape
    H2 = UV.shape[1]
    grid = (B_pad // TB,)
    weight_kw = dict(pipeline_mode=pl.Buffered(1)) if single_buffer_weights else {}

    return pl.pallas_call(
        _make_kernel(n_valid),
        out_shape=(
            jax.ShapeDtypeStruct((B_pad, Np, 1), out_dtype),
            jax.ShapeDtypeStruct((B_pad, D), out_dtype),
        ),
        grid_spec=pltpu.PrefetchScalarGridSpec(
            num_scalar_prefetch=0,
            grid=grid,
            in_specs=[
                pl.BlockSpec((TB, Np, D), lambda b: (b, 0, 0)),             # TB bags/step
                pl.BlockSpec((D, H2), lambda b: (0, 0), **weight_kw),       # fused 0.5U|V
                pl.BlockSpec((1, H2 // 2), lambda b: (0, 0), **weight_kw),  # 0.5*w lane vec
            ],
            out_specs=[
                pl.BlockSpec((TB, Np, 1), lambda b: (b, 0, 0)),             # attention scores
                pl.BlockSpec((TB, D), lambda b: (b, 0)),                    # weighted-avg slab
            ],
        ),
        compiler_params=pltpu.CompilerParams(
            dimension_semantics=("parallel",),   # bag blocks shard across v7x's 2 TCs
            vmem_limit_bytes=vmem_limit,
        ),
        cost_estimate=cost,
    )(x, UV, w_row)


def attention_feature_aggregator(img_features, U, V, w, *, use_bf16=False,
                                 block_bags=None):
    """img_features: [B, N, D]; U, V: [D, H] (Linear weights stored as [in, out]);
    w: [H, 1].  Returns (attn_scores [B, N, 1], attn_weighted_avg [B, D])."""
    B, N, D = img_features.shape
    H = U.shape[1]
    assert U.shape == (D, H) and V.shape == (D, H)
    assert w.shape == (H, 1), "kernel supports num_classes == 1 (module default)"
    out_dtype = img_features.dtype

    # Pad the hidden dim to a lane-tile multiple so p[:, :Hp] / p[:, Hp:] never
    # split a (8,128) tile.  Zero-padded columns contribute (tanh(0)+1)*tanh(0)=0
    # and w is zero there, so raw scores are unchanged.
    Hp = max(128, pl.cdiv(H, 128) * 128)
    if Hp != H:
        U = jnp.pad(U, ((0, 0), (0, Hp - H)))
        V = jnp.pad(V, ((0, 0), (0, Hp - H)))
        w = jnp.pad(w, ((0, Hp - H), (0, 0)))

    # Fold sigmoid's scalars into the weights:
    #   sigmoid(xU)*tanh(xV) @ w == (tanh(x*(0.5U)) + 1) * tanh(xV) @ (0.5*w)
    UV = jnp.concatenate([0.5 * U, V], axis=1)                      # (D, 2*Hp)
    w_row = (0.5 * jnp.reshape(w, (1, Hp))).astype(jnp.float32)     # (1, Hp)

    compute_dtype = jnp.bfloat16 if use_bf16 else img_features.dtype
    x = img_features.astype(compute_dtype)
    UV = UV.astype(compute_dtype)

    # Pad the instance dim to a sublane multiple; padded rows are masked to a huge
    # negative raw score in-kernel (softmax weight -> 0, so avg is unaffected).
    Np = pl.cdiv(N, 8) * 8
    if Np != N:
        x = jnp.pad(x, ((0, 0), (0, Np - N), (0, 0)))

    vmem_cap = _vmem_capacity_bytes()
    x_isz = jnp.dtype(compute_dtype).itemsize
    o_isz = jnp.dtype(out_dtype).itemsize
    if block_bags is not None:
        TB = min(int(block_bags), B)
        if TB < B and TB % 8:
            TB = max(8, (TB // 8) * 8)
    else:
        TB = _choose_block_bags(B, Np, D, Hp, x_isz, o_isz, vmem_cap)

    B_pad = pl.cdiv(B, TB) * TB
    if B_pad != B:
        # Zero padding: padded bags yield a finite uniform softmax and zero avg;
        # sliced off below.
        x = jnp.pad(x, ((0, B_pad - B), (0, 0), (0, 0)))

    cost = pl.CostEstimate(
        flops=int(2 * B * N * D * (2 * H) + 2 * B * N * H + 2 * B * N * D),
        transcendentals=int(2 * B * N * H + B * N),
        bytes_accessed=int(x.size * x_isz + UV.size * x_isz
                           + B * N * o_isz + B * D * o_isz),
    )
    vmem_limit = max(32 << 20, int(min(vmem_cap, 128 << 20) * 0.8))

    kwargs = dict(TB=TB, n_valid=N, out_dtype=out_dtype, cost=cost,
                  vmem_limit=vmem_limit)
    try:
        scores, avg = _pallas_forward(x, UV, w_row, single_buffer_weights=True,
                                      **kwargs)
    except Exception:
        # Fallback if this jax/mosaic build rejects pipeline_mode=pl.Buffered(1)
        # for the resident weights; only costs a little extra VMEM.
        scores, avg = _pallas_forward(x, UV, w_row, single_buffer_weights=False,
                                      **kwargs)

    scores = scores[:B, :N]
    avg = avg[:B]
    return scores, avg


def _reference(img_features, U, V, w):
    proj = jax.nn.sigmoid(img_features @ U) * jnp.tanh(img_features @ V)
    raw = proj @ w                                  # [B, N, 1]
    attn = jax.nn.softmax(raw, axis=1)
    avg = jnp.sum(img_features * attn, axis=1)
    return attn, avg


if __name__ == "__main__":
    key = jax.random.PRNGKey(0)

    # ---- Config 1: module defaults (hidden_dim=128), small ordered bags. ----
    B, N, D, H = 2, 8, 32, 128
    kx, ku, kv, kw = jax.random.split(key, 4)
    x = jax.random.normal(kx, (B, N, D), dtype=jnp.float32)
    U = jax.random.normal(ku, (D, H), dtype=jnp.float32) * 0.1
    V = jax.random.normal(kv, (D, H), dtype=jnp.float32) * 0.1
    w = jax.random.normal(kw, (H, 1), dtype=jnp.float32) * 0.1

    attn_ref, avg_ref = _reference(x, U, V, w)

    attn, avg = attention_feature_aggregator(x, U, V, w)
    jax.block_until_ready((attn, avg))
    assert attn.shape == (B, N, 1) and avg.shape == (B, D)
    assert jnp.allclose(attn, attn_ref, atol=1e-3, rtol=1e-3)
    assert jnp.allclose(avg, avg_ref, atol=1e-3, rtol=1e-3)

    # bf16 fast path: halved DMA bytes for x, bf16-native MXU; looser tolerance.
    attn_bf, avg_bf = attention_feature_aggregator(x, U, V, w, use_bf16=True)
    jax.block_until_ready((attn_bf, avg_bf))
    assert jnp.allclose(attn_bf, attn_ref, atol=2e-2, rtol=2e-2)
    assert jnp.allclose(avg_bf, avg_ref, atol=2e-2, rtol=2e-2)

    # ---- Config 2: exercises H padding (96->128), N padding (5->8) with the
    # -inf-style mask, bag padding / multi-step grid (B=20 -> TB=16, 2 steps). ----
    B2, N2, D2, H2 = 20, 5, 32, 96
    k1, k2, k3, k4 = jax.random.split(jax.random.PRNGKey(1), 4)
    x2 = jax.random.normal(k1, (B2, N2, D2), dtype=jnp.float32)
    U2 = jax.random.normal(k2, (D2, H2), dtype=jnp.float32) * 0.1
    V2 = jax.random.normal(k3, (D2, H2), dtype=jnp.float32) * 0.1
    w2 = jax.random.normal(k4, (H2, 1), dtype=jnp.float32) * 0.1

    attn2_ref, avg2_ref = _reference(x2, U2, V2, w2)
    attn2, avg2 = attention_feature_aggregator(x2, U2, V2, w2)
    jax.block_until_ready((attn2, avg2))
    assert attn2.shape == (B2, N2, 1) and avg2.shape == (B2, D2)
    assert jnp.allclose(attn2, attn2_ref, atol=1e-3, rtol=1e-3)
    assert jnp.allclose(avg2, avg2_ref, atol=1e-3, rtol=1e-3)

    print("KERNEL_OK")
</pallas_src>

<mosaic_0001>
module attributes {stable_mosaic.version = 11 : i64} {
  func.func @kernel(%arg0: i32, %arg1: memref<2x8x32xf32, #tpu.memory_space<vmem>>, %arg2: memref<32x256xf32, #tpu.memory_space<vmem>>, %arg3: memref<1x128xf32, #tpu.memory_space<vmem>>, %arg4: memref<2x8x1xf32, #tpu.memory_space<vmem>>, %arg5: memref<2x32xf32, #tpu.memory_space<vmem>>) attributes {dimension_semantics = [#tpu.dimension_semantics<parallel>], iteration_bounds = array<i64: 1>, scalar_prefetch = 0 : i64, scratch_operands = 0 : i64, tpu.core_type = #tpu.core_type<tc>, window_params = [{transform_indices = @transform_0, window_bounds = array<i64: 2, 8, 32>}, {pipeline_mode = #tpu.pipeline_mode<synchronous>, transform_indices = @transform_1, window_bounds = array<i64: 32, 256>}, {pipeline_mode = #tpu.pipeline_mode<synchronous>, transform_indices = @transform_2, window_bounds = array<i64: 1, 128>}, {transform_indices = @transform_3, window_bounds = array<i64: 2, 8, 1>}, {transform_indices = @transform_4, window_bounds = array<i64: 2, 32>}]} {
    %c0 = arith.constant 0 : index
    %c0_0 = arith.constant 0 : index
    %c0_1 = arith.constant 0 : index
    %0 = vector.load %arg1[%c0, %c0_0, %c0_1] : memref<2x8x32xf32, #tpu.memory_space<vmem>>, vector<2x8x32xf32>
    %1 = vector.shape_cast %0 : vector<2x8x32xf32> to vector<16x32xf32>
    %c0_2 = arith.constant 0 : index
    %c0_3 = arith.constant 0 : index
    %2 = vector.load %arg2[%c0_2, %c0_3] : memref<32x256xf32, #tpu.memory_space<vmem>>, vector<32x256xf32>
    %cst = arith.constant dense<0.000000e+00> : vector<16x256xf32>
    %3 = tpu.matmul %1, %2, %cst {dimension_numbers = #tpu.dot_dimension_numbers<[1], [0], [0], [1], [0, 0, 1, 1], [], []>} : vector<16x32xf32>, vector<32x256xf32>, vector<16x256xf32> -> vector<16x256xf32>
    %4 = vector.extract_strided_slice %3 {offsets = [0, 0], sizes = [16, 128], strides = [1, 1]} : vector<16x256xf32> to vector<16x128xf32>
    %5 = math.tanh %4 : vector<16x128xf32>
    %cst_4 = arith.constant 1.000000e+00 : f32
    %6 = vector.broadcast %cst_4 : f32 to vector<16x128xf32>
    %7 = arith.addf %5, %6 : vector<16x128xf32>
    %8 = vector.extract_strided_slice %3 {offsets = [0, 128], sizes = [16, 128], strides = [1, 1]} : vector<16x256xf32> to vector<16x128xf32>
    %9 = math.tanh %8 : vector<16x128xf32>
    %10 = arith.mulf %7, %9 : vector<16x128xf32>
    %c0_5 = arith.constant 0 : index
    %c0_6 = arith.constant 0 : index
    %11 = vector.load %arg3[%c0_5, %c0_6] : memref<1x128xf32, #tpu.memory_space<vmem>>, vector<1x128xf32>
    %12 = vector.broadcast %11 : vector<1x128xf32> to vector<16x128xf32>
    %13 = arith.mulf %10, %12 : vector<16x128xf32>
    %cst_7 = arith.constant dense<0.000000e+00> : vector<16xf32>
    %14 = vector.multi_reduction <add>, %13, %cst_7 [1] : vector<16x128xf32> to vector<16xf32>
    %15 = vector.shape_cast %14 : vector<16xf32> to vector<16x1xf32>
    %16 = vector.shape_cast %15 : vector<16x1xf32> to vector<2x8x1xf32>
    %cst_8 = arith.constant dense<0xFF800000> : vector<2x1xf32>
    %17 = vector.multi_reduction <maximumf>, %16, %cst_8 [1] : vector<2x8x1xf32> to vector<2x1xf32>
    %18 = vector.shape_cast %17 : vector<2x1xf32> to vector<2x1x1xf32>
    %19 = vector.broadcast %18 : vector<2x1x1xf32> to vector<2x8x1xf32>
    %20 = arith.subf %16, %19 : vector<2x8x1xf32>
    %21 = math.exp %20 : vector<2x8x1xf32>
    %cst_9 = arith.constant dense<0.000000e+00> : vector<2x1xf32>
    %22 = vector.multi_reduction <add>, %21, %cst_9 [1] : vector<2x8x1xf32> to vector<2x1xf32>
    %23 = vector.shape_cast %22 : vector<2x1xf32> to vector<2x1x1xf32>
    %24 = vector.broadcast %23 : vector<2x1x1xf32> to vector<2x8x1xf32>
    %25 = arith.divf %21, %24 : vector<2x8x1xf32>
    %c0_10 = arith.constant 0 : index
    %c0_11 = arith.constant 0 : index
    %c0_12 = arith.constant 0 : index
    %26 = vector.load %arg4[%c0_10, %c0_11, %c0_12] : memref<2x8x1xf32, #tpu.memory_space<vmem>>, vector<2x8x1xf32>
    tpu.vector_store %arg4[%c0_10, %c0_11, %c0_12], %25 {strides = array<i32>} : memref<2x8x1xf32, #tpu.memory_space<vmem>>, vector<2x8x1xf32>,
    %27 = vector.broadcast %25 : vector<2x8x1xf32> to vector<2x8x32xf32>
    %28 = arith.mulf %0, %27 : vector<2x8x32xf32>
    %cst_13 = arith.constant dense<0.000000e+00> : vector<2x32xf32>
    %29 = vector.multi_reduction <add>, %28, %cst_13 [1] : vector<2x8x32xf32> to vector<2x32xf32>
    %c0_14 = arith.constant 0 : index
    %c0_15 = arith.constant 0 : index
    %30 = vector.load %arg5[%c0_14, %c0_15] : memref<2x32xf32, #tpu.memory_space<vmem>>, vector<2x32xf32>
    tpu.vector_store %arg5[%c0_14, %c0_15], %29 {strides = array<i32>} : memref<2x32xf32, #tpu.memory_space<vmem>>, vector<2x32xf32>,
    return
  }
  func.func @transform_0(%arg0: i32) -> (i32, i32, i32) {
    %c0_i32 = arith.constant 0 : i32
    %c0_i32_0 = arith.constant 0 : i32
    %c0_i32_1 = arith.constant 0 : i32
    return %arg0, %c0_i32, %c0_i32_0 : i32, i32, i32
  }
  func.func @transform_1(%arg0: i32) -> (i32, i32) {
    %c0_i32 = arith.constant 0 : i32
    %c0_i32_0 = arith.constant 0 : i32
    %c0_i32_1 = arith.constant 0 : i32
    return %c0_i32, %c0_i32_0 : i32, i32
  }
  func.func @transform_2(%arg0: i32) -> (i32, i32) {
    %c0_i32 = arith.constant 0 : i32
    %c0_i32_0 = arith.constant 0 : i32
    %c0_i32_1 = arith.constant 0 : i32
    return %c0_i32, %c0_i32_0 : i32, i32
  }
  func.func @transform_3(%arg0: i32) -> (i32, i32, i32) {
    %c0_i32 = arith.constant 0 : i32
    %c0_i32_0 = arith.constant 0 : i32
    %c0_i32_1 = arith.constant 0 : i32
    return %arg0, %c0_i32, %c0_i32_0 : i32, i32, i32
  }
  func.func @transform_4(%arg0: i32) -> (i32, i32) {
    %c0_i32 = arith.constant 0 : i32
    %c0_i32_0 = arith.constant 0 : i32
    return %arg0, %c0_i32 : i32, i32
  }
}

module attributes {stable_mosaic.version = 11 : i64} {
  func.func @kernel(%arg0: i32, %arg1: memref<2x8x32xf32, #tpu.memory_space<vmem>>, %arg2: memref<32x256xf32, #tpu.memory_space<vmem>>, %arg3: memref<1x128xf32, #tpu.memory_space<vmem>>, %arg4: memref<2x8x1xf32, #tpu.memory_space<vmem>>, %arg5: memref<2x32xf32, #tpu.memory_space<vmem>>) attributes {dimension_semantics = [#tpu.dimension_semantics<parallel>], iteration_bounds = array<i64: 1>, scalar_prefetch = 0 : i64, scratch_operands = 0 : i64, tpu.core_type = #tpu.core_type<tc>, window_params = [{transform_indices = @transform_0, window_bounds = array<i64: 2, 8, 32>}, {pipeline_mode = #tpu.pipeline_mode<synchronous>, transform_indices = @transform_1, window_bounds = array<i64: 32, 256>}, {pipeline_mode = #tpu.pipeline_mode<synchronous>, transform_indices = @transform_2, window_bounds = array<i64: 1, 128>}, {transform_indices = @transform_3, window_bounds = array<i64: 2, 8, 1>}, {transform_indices = @transform_4, window_bounds = array<i64: 2, 32>}]} {
    %c0 = arith.constant 0 : index
    %c0_0 = arith.constant 0 : index
    %c0_1 = arith.constant 0 : index
    %0 = vector.load %arg1[%c0, %c0_0, %c0_1] : memref<2x8x32xf32, #tpu.memory_space<vmem>>, vector<2x8x32xf32>
    %1 = vector.shape_cast %0 : vector<2x8x32xf32> to vector<16x32xf32>
    %c0_2 = arith.constant 0 : index
    %c0_3 = arith.constant 0 : index
    %2 = vector.load %arg2[%c0_2, %c0_3] : memref<32x256xf32, #tpu.memory_space<vmem>>, vector<32x256xf32>
    %cst = arith.constant dense<0.000000e+00> : vector<16x256xf32>
    %3 = tpu.matmul %1, %2, %cst {dimension_numbers = #tpu.dot_dimension_numbers<[1], [0], [0], [1], [0, 0, 1, 1], [], []>} : vector<16x32xf32>, vector<32x256xf32>, vector<16x256xf32> -> vector<16x256xf32>
    %4 = vector.extract_strided_slice %3 {offsets = [0, 0], sizes = [16, 128], strides = [1, 1]} : vector<16x256xf32> to vector<16x128xf32>
    %5 = math.tanh %4 : vector<16x128xf32>
    %cst_4 = arith.constant 1.000000e+00 : f32
    %6 = vector.broadcast %cst_4 : f32 to vector<16x128xf32>
    %7 = arith.addf %5, %6 : vector<16x128xf32>
    %8 = vector.extract_strided_slice %3 {offsets = [0, 128], sizes = [16, 128], strides = [1, 1]} : vector<16x256xf32> to vector<16x128xf32>
    %9 = math.tanh %8 : vector<16x128xf32>
    %10 = arith.mulf %7, %9 : vector<16x128xf32>
    %c0_5 = arith.constant 0 : index
    %c0_6 = arith.constant 0 : index
    %11 = vector.load %arg3[%c0_5, %c0_6] : memref<1x128xf32, #tpu.memory_space<vmem>>, vector<1x128xf32>
    %12 = vector.broadcast %11 : vector<1x128xf32> to vector<16x128xf32>
    %13 = arith.mulf %10, %12 : vector<16x128xf32>
    %cst_7 = arith.constant dense<0.000000e+00> : vector<16xf32>
    %14 = vector.multi_reduction <add>, %13, %cst_7 [1] : vector<16x128xf32> to vector<16xf32>
    %15 = vector.shape_cast %14 : vector<16xf32> to vector<16x1xf32>
    %16 = vector.shape_cast %15 : vector<16x1xf32> to vector<2x8x1xf32>
    %cst_8 = arith.constant dense<0xFF800000> : vector<2x1xf32>
    %17 = vector.multi_reduction <maximumf>, %16, %cst_8 [1] : vector<2x8x1xf32> to vector<2x1xf32>
    %18 = vector.shape_cast %17 : vector<2x1xf32> to vector<2x1x1xf32>
    %19 = vector.broadcast %18 : vector<2x1x1xf32> to vector<2x8x1xf32>
    %20 = arith.subf %16, %19 : vector<2x8x1xf32>
    %21 = math.exp %20 : vector<2x8x1xf32>
    %cst_9 = arith.constant dense<0.000000e+00> : vector<2x1xf32>
    %22 = vector.multi_reduction <add>, %21, %cst_9 [1] : vector<2x8x1xf32> to vector<2x1xf32>
    %23 = vector.shape_cast %22 : vector<2x1xf32> to vector<2x1x1xf32>
    %24 = vector.broadcast %23 : vector<2x1x1xf32> to vector<2x8x1xf32>
    %25 = arith.divf %21, %24 : vector<2x8x1xf32>
    %c0_10 = arith.constant 0 : index
    %c0_11 = arith.constant 0 : index
    %c0_12 = arith.constant 0 : index
    %26 = vector.load %arg4[%c0_10, %c0_11, %c0_12] : memref<2x8x1xf32, #tpu.memory_space<vmem>>, vector<2x8x1xf32>
    tpu.vector_store %arg4[%c0_10, %c0_11, %c0_12], %25 {strides = array<i32>} : memref<2x8x1xf32, #tpu.memory_space<vmem>>, vector<2x8x1xf32>,
    %27 = vector.broadcast %25 : vector<2x8x1xf32> to vector<2x8x32xf32>
    %28 = arith.mulf %0, %27 : vector<2x8x32xf32>
    %cst_13 = arith.constant dense<0.000000e+00> : vector<2x32xf32>
    %29 = vector.multi_reduction <add>, %28, %cst_13 [1] : vector<2x8x32xf32> to vector<2x32xf32>
    %c0_14 = arith.constant 0 : index
    %c0_15 = arith.constant 0 : index
    %30 = vector.load %arg5[%c0_14, %c0_15] : memref<2x32xf32, #tpu.memory_space<vmem>>, vector<2x32xf32>
    tpu.vector_store %arg5[%c0_14, %c0_15], %29 {strides = array<i32>} : memref<2x32xf32, #tpu.memory_space<vmem>>, vector<2x32xf32>,
    return
  }
  func.func @transform_0(%arg0: i32) -> (i32, i32, i32) {
    %c0_i32 = arith.constant 0 : i32
    %c0_i32_0 = arith.constant 0 : i32
    %c0_i32_1 = arith.constant 0 : i32
    return %arg0, %c0_i32, %c0_i32_0 : i32, i32, i32
  }
  func.func @transform_1(%arg0: i32) -> (i32, i32) {
    %c0_i32 = arith.constant 0 : i32
    %c0_i32_0 = arith.constant 0 : i32
    %c0_i32_1 = arith.constant 0 : i32
    return %c0_i32, %c0_i32_0 : i32, i32
  }
  func.func @transform_2(%arg0: i32) -> (i32, i32) {
    %c0_i32 = arith.constant 0 : i32
    %c0_i32_0 = arith.constant 0 : i32
    %c0_i32_1 = arith.constant 0 : i32
    return %c0_i32, %c0_i32_0 : i32, i32
  }
  func.func @transform_3(%arg0: i32) -> (i32, i32, i32) {
    %c0_i32 = arith.constant 0 : i32
    %c0_i32_0 = arith.constant 0 : i32
    %c0_i32_1 = arith.constant 0 : i32
    return %arg0, %c0_i32, %c0_i32_0 : i32, i32, i32
  }
  func.func @transform_4(%arg0: i32) -> (i32, i32) {
    %c0_i32 = arith.constant 0 : i32
    %c0_i32_0 = arith.constant 0 : i32
    return %arg0, %c0_i32 : i32, i32
  }
}

</mosaic_0001>

<bundles_post_ra>
// kernel: tpu_custom_call.1
= control target key start
LH: loop header
LB: loop body
LE: loop exit
PB: predicated region body
PF: predicated region fallthrough
CT: control target
= control target key end

     0   :  { %10 = vsyncpa [#allocation3], 0  ;;  %s404_s0 = inlined_call_operand.hbm [shape: f32[2,8,32], index: 0, kind: input, shape index: {}]   ;;  %s405_s1 = inlined_call_operand.hbm [shape: f32[32,256], index: 1, kind: input, shape index: {}]   ;;  %s406_s2 = inlined_call_operand.vmem [shape: f32[1,128], index: 2, kind: input, shape index: {}]   ;;  %s407_s3 = inlined_call_operand.vmem [shape: f32[2,8,1], index: 3, kind: output, shape index: {0}]   ;;  %s408_s4 = inlined_call_operand.hbm [shape: f32[2,32], index: 4, kind: output, shape index: {1}]  }
   0x1   :  { %11 = vsyncpa [#allocation6], 0 }
   0x2   :  { %12 = vsyncpa [#allocation4], 0  ;;  %s341_s15 = smov [#allocation2]  }
   0x3   :  { %s18_s16 = sshll.u32 %s341_s15, 4  ;;  %s19_s16 = int_to_ptr.vmem [resolvable:$true] %s18_s16 }
   0x4   :  { %s283_s17 = scalar_lea.vmem %s19_s16, 256  ;;  %p288_p1 = scmp.lt.s32.totalorder %s19_s16, %s19_s16 }
   0x5   :  { %p284_p0 = scmp.ne.s32.totalorder %s19_s16, %s283_s17  ;;  %p289_p2 = scmp.lt.s32.totalorder %s283_s17, %s283_s17 }
   0x7   :  { %p290_p3 = por %p289_p2, %p288_p1 }
   0x9   :  { %p291_p4 = pnand %p290_p3, %p284_p0 }
   0xb   :  { %294 = shalt.err (!%p291_p4)
}
   0xc   :  { %s342_s18 = smov 128   ;;  %s343_s19 = smov 8  }
   0xd   :  { %24 = dma.hbm_to_vmem [thread:$0]  %s404_s0, 256, %s19_s16, [#allocation3], %s342_s18, %s342_s18, %s343_s19  }
   0xe   :  { %s344_s22 = smov [#allocation5]  }
   0xf   :  { %s30_s23 = sshll.u32 %s344_s22, 4  ;;  %s31_s23 = int_to_ptr.vmem [resolvable:$true] %s30_s23 }
  0x10   :  { %s303_s24 = scalar_lea.vmem %s31_s23, 1024  ;;  %p308_p6 = scmp.lt.s32.totalorder %s31_s23, %s31_s23 }
  0x11   :  { %p304_p5 = scmp.ne.s32.totalorder %s31_s23, %s303_s24  ;;  %p309_p7 = scmp.lt.s32.totalorder %s303_s24, %s303_s24 }
  0x13   :  { %p310_p8 = por %p309_p7, %p308_p6 }
  0x15   :  { %p311_p9 = pnand %p310_p8, %p304_p5 }
  0x17   :  { %314 = shalt.err (!%p311_p9)
}
  0x18   :  { %s345_s25 = smov 256   ;;  %s346_s26 = smov 16  }
  0x19   :  { %36 = dma.hbm_to_vmem [thread:$0]  %s405_s1, 1024, %s31_s23, [#allocation6], %s345_s25, %s345_s25, %s346_s26  }
  0x1a   :  { %335 = dma.done.wait [#allocation3], 256  }
  0x1b   :  { %336 = vsyncadd [#allocation3], 4294967040 }
  0x1c   :  { %337 = dma.done.wait [#allocation6], 1024  }
  0x1d   :  { %338 = vsyncadd [#allocation6], 4294966272  ;;  %v347_v0 = vmov 0.0   ;;  %v54_v1 = vld [vmem:[#allocation5 + $0x38] sm:$0xff]  ;;  %v53_v2 = vld [vmem:[#allocation5 + $0x30] sm:$0xff]  ;;  %vm55_vm0 = vcmask 261120  }
  0x1e   :  { %126 = vmatprep.mubr.f32.mxu0 %v347_v0  ;;  %132 = vmatprep.mubr.f32.mxu1 %v347_v0  ;;  %v52_v3 = vld [vmem:[#allocation5 + $0x28] sm:$0xff]  ;;  %v51_v4 = vld [vmem:[#allocation5 + $0x20] sm:$0xff]  ;;  %v50_v5 = vld [vmem:[#allocation5 + $0x18] sm:$0xff]  ;;  %vm194_vm1 = vcmask 7168   ;;  %s348_s6 = smov [#allocation7]   ;;  %vm215_vm2 = vcmask 1041409  }
  0x1f   :  { %86 = vmatprep.subr.mxu0 %v54_v1  ;;  %243 = vmatprep.subr.mxu1 %v54_v1  ;;  %v49_v6 = vld [vmem:[#allocation5 + $0x10] sm:$0xff]  ;;  %v48_v7 = vld [vmem:[#allocation5 + $0x8] sm:$0xff]  ;;  %v47_v8 = vld [vmem:[#allocation5] sm:$0xff]  ;;  %s228_s7 = sshll.u32 %s348_s6, 4  ;;  %vm218_vm3 = vcmask 254976   ;;  %s229_s7 = int_to_ptr.vmem [resolvable:$true] %s228_s7 }
  0x20   :  { %87 = vmatpush1.msra.mxu0 %v53_v2  ;;  %247 = vmatpush1.msra.mxu1 %v53_v2  ;;  %v380_v9 = vld [vmem:[#allocation2] sm:$0xff]  ;;  %v382_v10 = vld [vmem:[#allocation2 + $0x8] sm:$0xff]  ;;  %p320_p11 = scmp.lt.s32.totalorder %s229_s7, %s229_s7 }
  0x21   :  { %88 = vmatprep.subr.mxu0 %v52_v3  ;;  %244 = vmatprep.subr.mxu1 %v52_v3  ;;  %v242_v20 = vld [vmem:[%s406_s2] ss:$0 sm:$0xff] }
  0x22   :  { %89 = vmatpush1.msra.mxu0 %v51_v4  ;;  %248 = vmatpush1.msra.mxu1 %v51_v4 }
  0x23   :  { %90 = vmatprep.subr.mxu0 %v50_v5  ;;  %245 = vmatprep.subr.mxu1 %v50_v5 }
  0x24   :  { %91 = vmatpush1.msra.mxu0 %v49_v6  ;;  %249 = vmatpush1.msra.mxu1 %v49_v6 }
  0x25   :  { %92 = vmatprep.subr.mxu0 %v48_v7  ;;  %246 = vmatprep.subr.mxu1 %v48_v7 }
  0x26   :  { %93 = vmatpush1.msra.mxu0 %v47_v8  ;;  %250 = vmatpush1.msra.mxu1 %v47_v8 }
  0x27   :  { %240 = vmatmul.mubr.msk.f32.vlgmr.msra.gmra.mxu0 %vm55_vm0, %v380_v9  ;;  %241 = vmatmul.mubr.msk.f32.vlgmr.msra.gmra.mxu1 %vm55_vm0, %v382_v10 }
  0xe7   :  { %v128_v11 = vpop.f32.mrf.mxu0  ;;  %v134_v12 = vpop.f32.mrf.mxu1 }
  0xe8   :  { %259 = vtanh.f32 %v128_v11 }
  0xe9   :  { %v130_v13 = vpop.f32.mrf.mxu0  ;;  %261 = vtanh.f32 %v134_v12  ;;  %v136_v14 = vpop.f32.mrf.mxu1 }
  0xea   :  { %263 = vtanh.f32 %v130_v13 }
  0xeb   :  { %265 = vtanh.f32 %v136_v14 }
  0xf5   :  { %v260_v15 = vpop.eup %259 }
  0xf6   :  { %v262_v16 = vpop.eup %261  ;;  %v141_v17 = vadd.f32 1.0, %v260_v15 }
  0xf7   :  { %v264_v18 = vpop.eup %263  ;;  %v142_v19 = vadd.f32 1.0, %v262_v16 }
  0xf8   :  { %v266_v21 = vpop.eup %265  ;;  %v145_v22 = vmul.f32 %v264_v18, %v141_v17 }
  0xf9   :  { %v146_v24 = vmul.f32 %v266_v21, %v142_v19 }
  0xfa   :  { %v154_v23 = vmul.f32 %v242_v20, %v145_v22 }
  0xfb   :  { %v155_v25 = vmul.f32 %v242_v20, %v146_v24 }
  0xfc   :  { %156 = vadd.xlane.f32.xlu0 %v154_v23 }
 0x100   :  { %158 = vadd.xlane.f32.xlu0 %v155_v25 }
 0x185   :  { %v157_v26 = vpop.xlane.xlu0 %156 }
 0x186   :  { %v160_v27 = vrot.slane %v157_v26, 4 }
 0x188   :  { %v161_v28 = vmax.f32 %v157_v26, %v160_v27 }
 0x189   :  { %v159_v29 = vpop.xlane.xlu0 %158 }
 0x18a   :  { %v162_v30 = vrot.slane %v161_v28, 2  ;;  %v166_v31 = vrot.slane %v159_v29, 4 }
 0x18c   :  { %v163_v32 = vmax.f32 %v161_v28, %v162_v30  ;;  %v167_v33 = vmax.f32 %v159_v29, %v166_v31 }
 0x18e   :  { %v164_v34 = vrot.slane %v163_v32, 1  ;;  %v168_v35 = vrot.slane %v167_v33, 2 }
 0x190   :  { %v165_v36 = vmax.f32 %v163_v32, %v164_v34  ;;  %v169_v37 = vmax.f32 %v167_v33, %v168_v35 }
 0x192   :  { %v172_v38 = vsub.f32 %v157_v26, %v165_v36  ;;  %v170_v39 = vrot.slane %v169_v37, 1 }
 0x194   :  { %v174_v40 = vmul.f32 1.442695, %v172_v38  ;;  %v171_v41 = vmax.f32 %v169_v37, %v170_v39 }
 0x196   :  { %267 = vpow2.f32 %v174_v40  ;;  %v173_v42 = vsub.f32 %v159_v29, %v171_v41 }
 0x198   :  { %v176_v43 = vmul.f32 1.442695, %v173_v42 }
 0x19a   :  { %269 = vpow2.f32 %v176_v43 }
 0x1a3   :  { %v268_v44 = vpop.eup %267 }
 0x1a4   :  { %v178_v45 = vrot.slane %v268_v44, 4 }
 0x1a6   :  { %v179_v46 = vadd.f32 %v268_v44, %v178_v45 }
 0x1a7   :  { %v270_v47 = vpop.eup %269 }
 0x1a8   :  { %v184_v48 = vrot.slane %v270_v47, 4  ;;  %v180_v49 = vrot.slane %v179_v46, 2 }
 0x1aa   :  { %v185_v50 = vadd.f32 %v270_v47, %v184_v48  ;;  %v181_v51 = vadd.f32 %v180_v49, %v179_v46 }
 0x1ac   :  { %v182_v52 = vrot.slane %v181_v51, 1  ;;  %v186_v53 = vrot.slane %v185_v50, 2 }
 0x1ae   :  { %v183_v54 = vadd.f32 %v182_v52, %v181_v51  ;;  %v187_v55 = vadd.f32 %v186_v53, %v185_v50 }
 0x1b0   :  { %v188_v56 = vrot.slane %v187_v55, 1  ;;  %271 = vrcp.f32 %v183_v54 }
 0x1b2   :  { %v189_v57 = vadd.f32 %v188_v56, %v187_v55 }
 0x1b4   :  { %273 = vrcp.f32 %v189_v57 }
 0x1bd   :  { %v272_v58 = vpop.eup %271 }
 0x1be   :  { %v191_v59 = vmul.f32 %v272_v58, %v268_v44 }
 0x1c0   :  { %195 = vst.msk [vmem:[%s407_s3] sm:$0xff] %vm194_vm1, %v191_v59  ;;  %v197_v60 = vmul.f32 %v191_v59, %v380_v9 }
 0x1c1   :  { %v274_v61 = vpop.eup %273 }
 0x1c2   :  { %v193_v62 = vmul.f32 %v274_v61, %v270_v47  ;;  %v199_v63 = vsel %vm55_vm0, %v197_v60, 0.0 }
 0x1c3   :  { %v200_v0 = vrot.slane %v199_v63, 4 }
 0x1c4   :  { %196 = vst.msk [vmem:[%s407_s3 + $0x8] sm:$0xff] %vm194_vm1, %v193_v62  ;;  %v198_v1 = vmul.f32 %v193_v62, %v382_v10  ;;  %s315_s3 = scalar_lea.vmem %s229_s7, 32 }
 0x1c5   :  { %v201_v2 = vadd.f32 %v200_v0, %v199_v63  ;;  %p316_p10 = scmp.ne.s32.totalorder %s229_s7, %s315_s3  ;;  %p321_p12 = scmp.lt.s32.totalorder %s315_s3, %s315_s3 }
 0x1c6   :  { %v206_v3 = vsel %vm55_vm0, %v198_v1, 0.0 }
 0x1c7   :  { %v202_v4 = vrot.slane %v201_v2, 2  ;;  %v207_v5 = vrot.slane %v206_v3, 4  ;;  %p322_p13 = por %p321_p12, %p320_p11 }
 0x1c9   :  { %v203_v6 = vadd.f32 %v202_v4, %v201_v2  ;;  %v208_v7 = vadd.f32 %v207_v5, %v206_v3  ;;  %p323_p0 = pnand %p322_p13, %p316_p10 }
 0x1cb   :  { %v209_v8 = vrot.slane %v208_v7, 2  ;;  %v204_v9 = vrot.slane %v203_v6, 1 }
 0x1cd   :  { %v210_v11 = vadd.f32 %v209_v8, %v208_v7  ;;  %v205_v13 = vadd.f32 %v204_v9, %v203_v6 }
 0x1cf   :  { %v211_v12 = vrot.slane %v210_v11, 1 }
 0x1d1   :  { %v212_v14 = vadd.f32 %v211_v12, %v210_v11 }
 0x1d3   :  { %v216_v15 = vsel %vm215_vm2, %v212_v14, %v205_v13 }
 0x1d4   :  { %219 = vst.msk [vmem:[#allocation7] sm:$0x3] %vm218_vm3, %v216_v15 }
 0x1d5   :  { %326 = shalt.err (!%p323_p0)
}
 0x1d6   :  { %231 = dma.vmem_to_hbm [thread:$0]  %s229_s7, 32, %s408_s4, [#allocation4]  }
 0x1d7   :  { %339 = dma.done.wait [#allocation4], 32  }
 0x1d8   :  { %340 = vsyncadd [#allocation4], 4294967264 }
 0x1d9   :  { %237 = vsyncpa [#allocation3], 1 }
 0x1da   :  { %238 = vsyncpa [#allocation6], 1 }
 0x1db   :  { %239 = vsyncpa [#allocation4], 1 }

// kernel: tpu_custom_call.1
= control target key start
LH: loop header
LB: loop body
LE: loop exit
PB: predicated region body
PF: predicated region fallthrough
CT: control target
= control target key end

     0   :  { %10 = vsyncpa [#allocation3], 0  ;;  %s404_s0 = inlined_call_operand.hbm [shape: f32[2,8,32], index: 0, kind: input, shape index: {}]   ;;  %s405_s1 = inlined_call_operand.hbm [shape: f32[32,256], index: 1, kind: input, shape index: {}]   ;;  %s406_s2 = inlined_call_operand.vmem [shape: f32[1,128], index: 2, kind: input, shape index: {}]   ;;  %s407_s3 = inlined_call_operand.vmem [shape: f32[2,8,1], index: 3, kind: output, shape index: {0}]   ;;  %s408_s4 = inlined_call_operand.hbm [shape: f32[2,32], index: 4, kind: output, shape index: {1}]  }
   0x1   :  { %11 = vsyncpa [#allocation6], 0 }
   0x2   :  { %12 = vsyncpa [#allocation4], 0  ;;  %s341_s15 = smov [#allocation2]  }
   0x3   :  { %s18_s16 = sshll.u32 %s341_s15, 4  ;;  %s19_s16 = int_to_ptr.vmem [resolvable:$true] %s18_s16 }
   0x4   :  { %s283_s17 = scalar_lea.vmem %s19_s16, 256  ;;  %p288_p1 = scmp.lt.s32.totalorder %s19_s16, %s19_s16 }
   0x5   :  { %p284_p0 = scmp.ne.s32.totalorder %s19_s16, %s283_s17  ;;  %p289_p2 = scmp.lt.s32.totalorder %s283_s17, %s283_s17 }
   0x7   :  { %p290_p3 = por %p289_p2, %p288_p1 }
   0x9   :  { %p291_p4 = pnand %p290_p3, %p284_p0 }
   0xb   :  { %294 = shalt.err (!%p291_p4)
}
   0xc   :  { %s342_s18 = smov 128   ;;  %s343_s19 = smov 8  }
   0xd   :  { %24 = dma.hbm_to_vmem [thread:$0]  %s404_s0, 256, %s19_s16, [#allocation3], %s342_s18, %s342_s18, %s343_s19  }
   0xe   :  { %s344_s22 = smov [#allocation5]  }
   0xf   :  { %s30_s23 = sshll.u32 %s344_s22, 4  ;;  %s31_s23 = int_to_ptr.vmem [resolvable:$true] %s30_s23 }
  0x10   :  { %s303_s24 = scalar_lea.vmem %s31_s23, 1024  ;;  %p308_p6 = scmp.lt.s32.totalorder %s31_s23, %s31_s23 }
  0x11   :  { %p304_p5 = scmp.ne.s32.totalorder %s31_s23, %s303_s24  ;;  %p309_p7 = scmp.lt.s32.totalorder %s303_s24, %s303_s24 }
  0x13   :  { %p310_p8 = por %p309_p7, %p308_p6 }
  0x15   :  { %p311_p9 = pnand %p310_p8, %p304_p5 }
  0x17   :  { %314 = shalt.err (!%p311_p9)
}
  0x18   :  { %s345_s25 = smov 256   ;;  %s346_s26 = smov 16  }
  0x19   :  { %36 = dma.hbm_to_vmem [thread:$0]  %s405_s1, 1024, %s31_s23, [#allocation6], %s345_s25, %s345_s25, %s346_s26  }
  0x1a   :  { %335 = dma.done.wait [#allocation3], 256  }
  0x1b   :  { %336 = vsyncadd [#allocation3], 4294967040 }
  0x1c   :  { %337 = dma.done.wait [#allocation6], 1024  }
  0x1d   :  { %338 = vsyncadd [#allocation6], 4294966272  ;;  %v347_v0 = vmov 0.0   ;;  %v54_v1 = vld [vmem:[#allocation5 + $0x38] sm:$0xff]  ;;  %v53_v2 = vld [vmem:[#allocation5 + $0x30] sm:$0xff]  ;;  %vm55_vm0 = vcmask 261120  }
  0x1e   :  { %126 = vmatprep.mubr.f32.mxu0 %v347_v0  ;;  %132 = vmatprep.mubr.f32.mxu1 %v347_v0  ;;  %v52_v3 = vld [vmem:[#allocation5 + $0x28] sm:$0xff]  ;;  %v51_v4 = vld [vmem:[#allocation5 + $0x20] sm:$0xff]  ;;  %v50_v5 = vld [vmem:[#allocation5 + $0x18] sm:$0xff]  ;;  %vm194_vm1 = vcmask 7168   ;;  %s348_s6 = smov [#allocation7]   ;;  %vm215_vm2 = vcmask 1041409  }
  0x1f   :  { %86 = vmatprep.subr.mxu0 %v54_v1  ;;  %243 = vmatprep.subr.mxu1 %v54_v1  ;;  %v49_v6 = vld [vmem:[#allocation5 + $0x10] sm:$0xff]  ;;  %v48_v7 = vld [vmem:[#allocation5 + $0x8] sm:$0xff]  ;;  %v47_v8 = vld [vmem:[#allocation5] sm:$0xff]  ;;  %s228_s7 = sshll.u32 %s348_s6, 4  ;;  %vm218_vm3 = vcmask 254976   ;;  %s229_s7 = int_to_ptr.vmem [resolvable:$true] %s228_s7 }
  0x20   :  { %87 = vmatpush1.msra.mxu0 %v53_v2  ;;  %247 = vmatpush1.msra.mxu1 %v53_v2  ;;  %v380_v9 = vld [vmem:[#allocation2] sm:$0xff]  ;;  %v382_v10 = vld [vmem:[#allocation2 + $0x8] sm:$0xff]  ;;  %p320_p11 = scmp.lt.s32.totalorder %s229_s7, %s229_s7 }
  0x21   :  { %88 = vmatprep.subr.mxu0 %v52_v3  ;;  %244 = vmatprep.subr.mxu1 %v52_v3  ;;  %v242_v20 = vld [vmem:[%s406_s2] ss:$0 sm:$0xff] }
  0x22   :  { %89 = vmatpush1.msra.mxu0 %v51_v4  ;;  %248 = vmatpush1.msra.mxu1 %v51_v4 }
  0x23   :  { %90 = vmatprep.subr.mxu0 %v50_v5  ;;  %245 = vmatprep.subr.mxu1 %v50_v5 }
  0x24   :  { %91 = vmatpush1.msra.mxu0 %v49_v6  ;;  %249 = vmatpush1.msra.mxu1 %v49_v6 }
  0x25   :  { %92 = vmatprep.subr.mxu0 %v48_v7  ;;  %246 = vmatprep.subr.mxu1 %v48_v7 }
  0x26   :  { %93 = vmatpush1.msra.mxu0 %v47_v8  ;;  %250 = vmatpush1.msra.mxu1 %v47_v8 }
  0x27   :  { %240 = vmatmul.mubr.msk.f32.vlgmr.msra.gmra.mxu0 %vm55_vm0, %v380_v9  ;;  %241 = vmatmul.mubr.msk.f32.vlgmr.msra.gmra.mxu1 %vm55_vm0, %v382_v10 }
  0xe7   :  { %v128_v11 = vpop.f32.mrf.mxu0  ;;  %v134_v12 = vpop.f32.mrf.mxu1 }
  0xe8   :  { %259 = vtanh.f32 %v128_v11 }
  0xe9   :  { %v130_v13 = vpop.f32.mrf.mxu0  ;;  %261 = vtanh.f32 %v134_v12  ;;  %v136_v14 = vpop.f32.mrf.mxu1 }
  0xea   :  { %263 = vtanh.f32 %v130_v13 }
  0xeb   :  { %265 = vtanh.f32 %v136_v14 }
  0xf5   :  { %v260_v15 = vpop.eup %259 }
  0xf6   :  { %v262_v16 = vpop.eup %261  ;;  %v141_v17 = vadd.f32 1.0, %v260_v15 }
  0xf7   :  { %v264_v18 = vpop.eup %263  ;;  %v142_v19 = vadd.f32 1.0, %v262_v16 }
  0xf8   :  { %v266_v21 = vpop.eup %265  ;;  %v145_v22 = vmul.f32 %v264_v18, %v141_v17 }
  0xf9   :  { %v146_v24 = vmul.f32 %v266_v21, %v142_v19 }
  0xfa   :  { %v154_v23 = vmul.f32 %v242_v20, %v145_v22 }
  0xfb   :  { %v155_v25 = vmul.f32 %v242_v20, %v146_v24 }
  0xfc   :  { %156 = vadd.xlane.f32.xlu0 %v154_v23 }
 0x100   :  { %158 = vadd.xlane.f32.xlu0 %v155_v25 }
 0x185   :  { %v157_v26 = vpop.xlane.xlu0 %156 }
 0x186   :  { %v160_v27 = vrot.slane %v157_v26, 4 }
 0x188   :  { %v161_v28 = vmax.f32 %v157_v26, %v160_v27 }
 0x189   :  { %v159_v29 = vpop.xlane.xlu0 %158 }
 0x18a   :  { %v162_v30 = vrot.slane %v161_v28, 2  ;;  %v166_v31 = vrot.slane %v159_v29, 4 }
 0x18c   :  { %v163_v32 = vmax.f32 %v161_v28, %v162_v30  ;;  %v167_v33 = vmax.f32 %v159_v29, %v166_v31 }
 0x18e   :  { %v164_v34 = vrot.slane %v163_v32, 1  ;;  %v168_v35 = vrot.slane %v167_v33, 2 }
 0x190   :  { %v165_v36 = vmax.f32 %v163_v32, %v164_v34  ;;  %v169_v37 = vmax.f32 %v167_v33, %v168_v35 }
 0x192   :  { %v172_v38 = vsub.f32 %v157_v26, %v165_v36  ;;  %v170_v39 = vrot.slane %v169_v37, 1 }
 0x194   :  { %v174_v40 = vmul.f32 1.442695, %v172_v38  ;;  %v171_v41 = vmax.f32 %v169_v37, %v170_v39 }
 0x196   :  { %267 = vpow2.f32 %v174_v40  ;;  %v173_v42 = vsub.f32 %v159_v29, %v171_v41 }
 0x198   :  { %v176_v43 = vmul.f32 1.442695, %v173_v42 }
 0x19a   :  { %269 = vpow2.f32 %v176_v43 }
 0x1a3   :  { %v268_v44 = vpop.eup %267 }
 0x1a4   :  { %v178_v45 = vrot.slane %v268_v44, 4 }
 0x1a6   :  { %v179_v46 = vadd.f32 %v268_v44, %v178_v45 }
 0x1a7   :  { %v270_v47 = vpop.eup %269 }
 0x1a8   :  { %v184_v48 = vrot.slane %v270_v47, 4  ;;  %v180_v49 = vrot.slane %v179_v46, 2 }
 0x1aa   :  { %v185_v50 = vadd.f32 %v270_v47, %v184_v48  ;;  %v181_v51 = vadd.f32 %v180_v49, %v179_v46 }
 0x1ac   :  { %v182_v52 = vrot.slane %v181_v51, 1  ;;  %v186_v53 = vrot.slane %v185_v50, 2 }
 0x1ae   :  { %v183_v54 = vadd.f32 %v182_v52, %v181_v51  ;;  %v187_v55 = vadd.f32 %v186_v53, %v185_v50 }
 0x1b0   :  { %v188_v56 = vrot.slane %v187_v55, 1  ;;  %271 = vrcp.f32 %v183_v54 }
 0x1b2   :  { %v189_v57 = vadd.f32 %v188_v56, %v187_v55 }
 0x1b4   :  { %273 = vrcp.f32 %v189_v57 }
 0x1bd   :  { %v272_v58 = vpop.eup %271 }
 0x1be   :  { %v191_v59 = vmul.f32 %v272_v58, %v268_v44 }
 0x1c0   :  { %195 = vst.msk [vmem:[%s407_s3] sm:$0xff] %vm194_vm1, %v191_v59  ;;  %v197_v60 = vmul.f32 %v191_v59, %v380_v9 }
 0x1c1   :  { %v274_v61 = vpop.eup %273 }
 0x1c2   :  { %v193_v62 = vmul.f32 %v274_v61, %v270_v47  ;;  %v199_v63 = vsel %vm55_vm0, %v197_v60, 0.0 }
 0x1c3   :  { %v200_v0 = vrot.slane %v199_v63, 4 }
 0x1c4   :  { %196 = vst.msk [vmem:[%s407_s3 + $0x8] sm:$0xff] %vm194_vm1, %v193_v62  ;;  %v198_v1 = vmul.f32 %v193_v62, %v382_v10  ;;  %s315_s3 = scalar_lea.vmem %s229_s7, 32 }
 0x1c5   :  { %v201_v2 = vadd.f32 %v200_v0, %v199_v63  ;;  %p316_p10 = scmp.ne.s32.totalorder %s229_s7, %s315_s3  ;;  %p321_p12 = scmp.lt.s32.totalorder %s315_s3, %s315_s3 }
 0x1c6   :  { %v206_v3 = vsel %vm55_vm0, %v198_v1, 0.0 }
 0x1c7   :  { %v202_v4 = vrot.slane %v201_v2, 2  ;;  %v207_v5 = vrot.slane %v206_v3, 4  ;;  %p322_p13 = por %p321_p12, %p320_p11 }
 0x1c9   :  { %v203_v6 = vadd.f32 %v202_v4, %v201_v2  ;;  %v208_v7 = vadd.f32 %v207_v5, %v206_v3  ;;  %p323_p0 = pnand %p322_p13, %p316_p10 }
 0x1cb   :  { %v209_v8 = vrot.slane %v208_v7, 2  ;;  %v204_v9 = vrot.slane %v203_v6, 1 }
 0x1cd   :  { %v210_v11 = vadd.f32 %v209_v8, %v208_v7  ;;  %v205_v13 = vadd.f32 %v204_v9, %v203_v6 }
 0x1cf   :  { %v211_v12 = vrot.slane %v210_v11, 1 }
 0x1d1   :  { %v212_v14 = vadd.f32 %v211_v12, %v210_v11 }
 0x1d3   :  { %v216_v15 = vsel %vm215_vm2, %v212_v14, %v205_v13 }
 0x1d4   :  { %219 = vst.msk [vmem:[#allocation7] sm:$0x3] %vm218_vm3, %v216_v15 }
 0x1d5   :  { %326 = shalt.err (!%p323_p0)
}
 0x1d6   :  { %231 = dma.vmem_to_hbm [thread:$0]  %s229_s7, 32, %s408_s4, [#allocation4]  }
 0x1d7   :  { %339 = dma.done.wait [#allocation4], 32  }
 0x1d8   :  { %340 = vsyncadd [#allocation4], 4294967264 }
 0x1d9   :  { %237 = vsyncpa [#allocation3], 1 }
 0x1da   :  { %238 = vsyncpa [#allocation6], 1 }
 0x1db   :  { %239 = vsyncpa [#allocation4], 1 }

</bundles_post_ra>
